<compile_context>
chip_gen: v7x
topology: tpu7x:2x2x1
jax: 0.10.0
libtpu: 0.0.40
codegen_flags: <defaults>
</compile_context>

<pallas_src>
import numpy as np
import jax
import jax.numpy as jnp
from jax.experimental import pallas as pl
from jax.experimental.pallas import tpu as pltpu

_LANE = 128
_WIDTH_CANDIDATES = (4096, 2048, 1024, 512, 256, 128)   # lane-dense last dims
_MiB = 1024 * 1024
_SINGLE_BLOCK_MAX_BYTES = 2 * _MiB     # slabs below this: one block is fine
_SMALL_FAST_PATH = 512 * 1024          # elements (~2 MiB f32): use jnp.full

# Per-generation tiling defaults (target tile bytes, max single-tile bytes,
# whether to shard the fill grid across both TensorCores).
_GEN_CONFIG = {
    "v7": dict(target_bytes=8 * _MiB, max_single_bytes=12 * _MiB, core_parallel=True),
    "v6": dict(target_bytes=6 * _MiB, max_single_bytes=8 * _MiB, core_parallel=False),
    "v5": dict(target_bytes=4 * _MiB, max_single_bytes=6 * _MiB, core_parallel=False),
    "unknown": dict(target_bytes=4 * _MiB, max_single_bytes=6 * _MiB, core_parallel=False),
}


def _chip_generation():
    try:
        kind = jax.devices()[0].device_kind.lower()
    except Exception:
        return "unknown"
    if "v7" in kind or "7x" in kind:
        return "v7"
    if "v6" in kind:
        return "v6"
    if "v5" in kind:
        return "v5"
    return "unknown"


def _fill_kernel(const_ref, out_ref):
    # const_ref: (1,) scalar in SMEM; out_ref: (tile_r, W) VMEM tile.
    # The VPU splat hides entirely under the output HBM DMA (vst bandwidth >>
    # HBM write bandwidth on every generation), so no in-kernel micro-opts.
    out_ref[...] = jnp.full(out_ref.shape, const_ref[0], out_ref.dtype)


def _ceil_to(x, m):
    return -(-x // m) * m


def _choose_layout(total, itemsize, target_bytes, max_single_bytes, prefer_even):
    """Pick (rows, width, tile_r) for an exact, lane-dense 2-D slab."""
    for width in _WIDTH_CANDIDATES:
        if total % width == 0:
            break
    rows = total // width
    row_bytes = width * itemsize
    slab_bytes = rows * row_bytes

    # Small slabs: one block; pipelining / core split would not pay off.
    single_block_max = min(_SINGLE_BLOCK_MAX_BYTES, target_bytes)
    if slab_bytes <= single_block_max:
        return rows, width, rows

    # Larger slabs get >= 2 grid steps so writeback of block i-1 overlaps the
    # fill of block i.  Largest legal tile = half the rows (rounded to 8),
    # further capped by the per-tile VMEM budget.
    half_rows = _ceil_to(-(-rows // 2), 8)
    max_tile_rows = min(half_rows, (max_single_bytes // row_bytes) // 8 * 8)
    if max_tile_rows < 8:
        return rows, width, rows   # degenerate (can't happen for >2 MiB slabs)
    target_rows = max(8, min((target_bytes // row_bytes) // 8 * 8, max_tile_rows))

    # (a) Exact multiple-of-8 divisor of `rows`, searched UPWARD from the
    # target (up to min(max_tile, 4x target)) so tiles never shrink below it.
    if rows % 8 == 0:
        upper = min(max_tile_rows, 4 * target_rows)
        divisors = [c for c in range(target_rows, upper + 1, 8) if rows % c == 0]
        if prefer_even:
            for c in divisors:
                if (rows // c) % 2 == 0:       # balanced split across 2 cores
                    return rows, width, c
        if divisors:
            return rows, width, divisors[0]

    # (b) No convenient divisor: keep the full-size target tile; Pallas masks
    # the clipped trailing block.
    tile_r = target_rows
    if prefer_even:
        n = -(-rows // tile_r)
        if n % 2 and n >= 3:
            alt = _ceil_to(-(-rows // (n + 1)), 8)
            if alt >= 8 and (-(-rows // alt)) % 2 == 0:
                tile_r = alt
    return rows, width, tile_r


def constant_of_shape(shape, constant, *,
                      min_pallas_elements=_SMALL_FAST_PATH,
                      target_block_bytes=None,
                      max_single_block_bytes=None,
                      core_parallel=None):
    """Pallas equivalent of ConstantOfShape.forward.

    shape: sequence of python ints (values of the ONNX `shape` input).
    constant: array-like constant (standard ONNX: one element).
    target_block_bytes / max_single_block_bytes / core_parallel: optional
      overrides of the per-chip-generation auto defaults (mainly for testing).
    """
    shape = tuple(int(s) for s in shape)
    constant = jnp.asarray(constant)
    # torch.ones(*shape) is float32; result dtype = promote(constant, f32).
    # (f64 constants stay f32 under default JAX x64=off — fidelity gap vs torch.)
    out_dtype = jnp.result_type(constant.dtype, jnp.float32)

    if constant.size != 1:
        # Non-standard for ONNX ConstantOfShape, but torch would broadcast:
        # constant * ones(shape).  Use XLA broadcasting, never truncate.
        return constant.astype(out_dtype) * jnp.ones(shape, out_dtype)

    const_scalar = constant.reshape((1,)).astype(out_dtype)
    total = int(np.prod(shape, dtype=np.int64)) if len(shape) > 0 else 1
    itemsize = jnp.dtype(out_dtype).itemsize

    # Fast path: small or lane-ragged fills — XLA's native fill is already at
    # HBM roofline and avoids pallas_call fixed overhead / tail handling.
    if total < max(1, min_pallas_elements) or total % _LANE != 0:
        return jnp.full(shape, const_scalar[0], dtype=out_dtype)

    cfg = _GEN_CONFIG[_chip_generation()]
    target_bytes = int(target_block_bytes) if target_block_bytes else cfg["target_bytes"]
    max_single = (int(max_single_block_bytes) if max_single_block_bytes
                  else cfg["max_single_bytes"])
    use_core_parallel = (cfg["core_parallel"] if core_parallel is None
                         else bool(core_parallel))

    rows, width, tile_r = _choose_layout(
        total, itemsize, target_bytes, max_single, use_core_parallel)
    nblocks = pl.cdiv(rows, tile_r)

    sem = ((pltpu.CORE_PARALLEL,) if (use_core_parallel and nblocks >= 2)
           else ("parallel",))

    slab = pl.pallas_call(
        _fill_kernel,
        out_shape=jax.ShapeDtypeStruct((rows, width), out_dtype),
        grid=(nblocks,),
        in_specs=[pl.BlockSpec(memory_space=pltpu.SMEM)],
        out_specs=pl.BlockSpec((tile_r, width), lambda i: (i, 0)),
        compiler_params=pltpu.CompilerParams(dimension_semantics=sem),
        cost_estimate=pl.CostEstimate(
            flops=0, transcendentals=0, bytes_accessed=total * itemsize),
    )(const_scalar)

    # Exact element count -> row-major reshape back to N-D is free.
    return slab.reshape(shape)


if __name__ == "__main__":
    key = jax.random.PRNGKey(0)

    # The module's __init__ takes a numpy constant; initialize deterministically.
    constant = np.asarray(
        jax.random.uniform(key, (1,), dtype=jnp.float32, minval=0.5, maxval=2.0))
    cval = np.float32(constant[0])

    def _check(shape, **kw):
        out = jax.block_until_ready(constant_of_shape(shape, constant, **kw))
        assert out.shape == tuple(shape), (out.shape, shape)
        assert out.dtype == jnp.float32, out.dtype
        expected = np.full(tuple(shape), cval, dtype=np.float32)
        np.testing.assert_allclose(np.asarray(out), expected, rtol=0, atol=0)

    # 1) Typical small NCHW use of the module -> jnp.full fast path.
    _check([2, 4, 16, 16])
    # 2) Same small shape forced through Pallas (single (1, 2048) block).
    _check([2, 4, 16, 16], min_pallas_elements=0)
    # 3) Natural defaults, multi-block exact-divisor path:
    #    8 MiB f32 -> (512, 4096) slab split into >= 2 full-size blocks.
    _check([16, 8, 128, 128])
    # 4) Forced-small-tile multi-block path: (32, 4096) slab, 8-row tiles,
    #    4 evenly sized blocks (exact-divisor branch).
    _check([8, 128, 128], min_pallas_elements=0,
           target_block_bytes=128 * 1024, max_single_block_bytes=256 * 1024)
    # 5) Clipped trailing block path: (200, 4096) slab with 64-row tiles ->
    #    grid of 4, last block masked to 8 valid rows.
    _check([25, 256, 128], min_pallas_elements=0,
           target_block_bytes=1 * _MiB, max_single_block_bytes=int(1.5 * _MiB))

    print("KERNEL_OK")
</pallas_src>

<mosaic_0001>
module attributes {stable_mosaic.version = 11 : i64} {
  func.func @_fill_kernel(%arg0: i32, %arg1: memref<1xf32, #tpu.memory_space<smem>>, %arg2: memref<1x2048xf32, #tpu.memory_space<vmem>>) attributes {dimension_semantics = [#tpu.dimension_semantics<parallel>], iteration_bounds = array<i64: 1>, scalar_prefetch = 0 : i64, scratch_operands = 0 : i64, tpu.core_type = #tpu.core_type<tc>, window_params = [{transform_indices = @transform_0, window_bounds = array<i64: 1>}, {transform_indices = @transform_1, window_bounds = array<i64: 1, 2048>}]} {
    %c0 = arith.constant 0 : index
    %0 = memref.load %arg1[%c0] : memref<1xf32, #tpu.memory_space<smem>>
    %1 = vector.broadcast %0 : f32 to vector<1x2048xf32>
    %c0_0 = arith.constant 0 : index
    %c0_1 = arith.constant 0 : index
    %2 = vector.load %arg2[%c0_0, %c0_1] : memref<1x2048xf32, #tpu.memory_space<vmem>>, vector<1x2048xf32>
    tpu.vector_store %arg2[%c0_0, %c0_1], %1 {strides = array<i32>} : memref<1x2048xf32, #tpu.memory_space<vmem>>, vector<1x2048xf32>,
    return
  }
  func.func @transform_0(%arg0: i32) -> i32 {
    %c0_i32 = arith.constant 0 : i32
    %c0_i32_0 = arith.constant 0 : i32
    return %c0_i32 : i32
  }
  func.func @transform_1(%arg0: i32) -> (i32, i32) {
    %c0_i32 = arith.constant 0 : i32
    %c0_i32_0 = arith.constant 0 : i32
    return %arg0, %c0_i32 : i32, i32
  }
}

</mosaic_0001>

<bundles_post_ra>
// kernel: tpu_custom_call.1
= control target key start
LH: loop header
LB: loop body
LE: loop exit
PB: predicated region body
PF: predicated region fallthrough
CT: control target
= control target key end

     0   :  { %s79_s0 = inlined_call_operand.<no memory space> [shape: f32[1], index: 0, kind: input, shape index: {}]   ;;  %s80_s1 = inlined_call_operand.hbm [shape: f32[1,2048], index: 1, kind: output, shape index: {}]  }
   0x1   :  { %v11_v0 = vstv %s79_s0 }
   0x2   :  { %7 = vsyncpa [#allocation4], 0  ;;  %12 = vst [vmem:[#allocation3] sm:$0xff] %v11_v0  ;;  %s53_s8 = smov [#allocation3]  }
   0x3   :  { %13 = vst [vmem:[#allocation3 + $0x8] sm:$0xff] %v11_v0  ;;  %s20_s9 = sshll.u32 %s53_s8, 4  ;;  %s21_s9 = int_to_ptr.vmem [resolvable:$true] %s20_s9 }
   0x4   :  { %s29_s10 = scalar_lea.vmem %s21_s9, 256  ;;  %p34_p1 = scmp.lt.s32.totalorder %s21_s9, %s21_s9 }
   0x5   :  { %p30_p0 = scmp.ne.s32.totalorder %s21_s9, %s29_s10  ;;  %p35_p2 = scmp.lt.s32.totalorder %s29_s10, %s29_s10 }
   0x7   :  { %p36_p3 = por %p35_p2, %p34_p1 }
   0x9   :  { %p37_p4 = pnand %p36_p3, %p30_p0 }
   0xb   :  { %40 = shalt.err (!%p37_p4)
}
   0xc   :  { %s41_s13 = scalar_lea.hbm %s80_s1, 256 }
   0xd   :  { %p42_p5 = scmp.ne.s32.totalorder %s80_s1, %s41_s13  ;;  %p45_p6 = scmp.lt.u32.totalorder %s41_s13, %s80_s1 }
   0xf   :  { %p47_p7 = pnand %p45_p6, %p42_p5 }
  0x11   :  { %50 = shalt.err (!%p47_p7)
}
  0x12   :  { %23 = dma.vmem_to_hbm [thread:$0]  %s21_s9, 256, %s80_s1, [#allocation4]  }
  0x13   :  { %51 = dma.done.wait [#allocation4], 256  }
  0x14   :  { %52 = vsyncadd [#allocation4], 4294967040 }
  0x15   :  { %27 = vsyncpa [#allocation4], 1 }

</bundles_post_ra>
